<compile_context>
chip_gen: v6e
topology: v6e:2x2x1
jax: 0.10.0
libtpu: 0.0.40
codegen_flags: <defaults>
</compile_context>

<pallas_src>
import functools

import jax
import jax.numpy as jnp
from jax import lax
from jax.experimental import pallas as pl
from jax.experimental.pallas import tpu as pltpu


def _round_up(v, m):
    return (v + m - 1) // m * m


def _pick_tile_n(n, k_in_p, k_out_p, budget_bytes=24 * 1024 * 1024):
    """Largest N-tile (multiple of 8) whose double-buffered f32 tiles fit a
    conservative VMEM budget that works on v7x (64 MiB) as well as v5e/v6e."""
    w_bytes = 2 * 4 * k_in_p * k_out_p               # resident weight block
    per_row = 2 * 4 * (k_in_p + 2 * k_out_p)         # x + y + out tiles, 2x buffered
    avail = max(budget_bytes - w_bytes, per_row * 8)
    t = max(8, (avail // per_row) // 8 * 8)
    t = min(t, 1024)                                 # already amortizes grid overhead
    t = min(t, _round_up(n, 8))
    return int(t)


# ---------------------------------------------------------------------------
# Pass 1 (BN path): per-N-tile Linear (no bias) + per-tile BN partial stats.
# ---------------------------------------------------------------------------
def _linear_stats_kernel(x_ref, w_ref, y_ref, stats_ref):
    # Contract last dim of x with last dim of w (PyTorch (k_out, k_in) layout,
    # no transpose needed).
    y = lax.dot_general(
        x_ref[...], w_ref[...],
        dimension_numbers=(((1,), (1,)), ((), ())),
        preferred_element_type=jnp.float32)
    y_ref[...] = y
    # Per-tile partial statistics; the cross-tile reduction happens outside.
    stats_ref[0:1, :] = jnp.sum(y, axis=0, keepdims=True)
    stats_ref[1:2, :] = jnp.sum(y * y, axis=0, keepdims=True)


# ---------------------------------------------------------------------------
# Pass 2 (BN path): fused scale/shift (BN affine folded) + ReLU + residual.
# ---------------------------------------------------------------------------
def _scale_relu_residual_kernel(*refs, residual: bool):
    if residual:
        y_ref, scale_ref, shift_ref, x_ref, o_ref = refs
    else:
        y_ref, scale_ref, shift_ref, o_ref = refs
    out = y_ref[...] * scale_ref[...] + shift_ref[...]
    out = jnp.maximum(out, 0.0)
    if residual:
        out = out + x_ref[...]
    o_ref[...] = out.astype(o_ref.dtype)


# ---------------------------------------------------------------------------
# use_bn=False path: single fused Linear(+bias) -> ReLU -> residual pass.
# ---------------------------------------------------------------------------
def _linear_relu_kernel(x_ref, w_ref, b_ref, o_ref, *, residual: bool):
    y = lax.dot_general(
        x_ref[...], w_ref[...],
        dimension_numbers=(((1,), (1,)), ((), ())),
        preferred_element_type=jnp.float32)
    y = y + b_ref[...]
    y = jnp.maximum(y, 0.0)
    if residual:
        y = y + x_ref[...]
    o_ref[...] = y.astype(o_ref.dtype)


def fc_layer(x, w, b, gamma=None, beta=None, *, use_bn=True, eps=1e-5,
             tile_n=None):
    """Pallas implementation of FCLayer.forward.

    x:     (..., k_in)  float32
    w:     (k_out, k_in)  (PyTorch nn.Linear layout, not transposed)
    b:     (k_out,)
    gamma: (k_out,)  BatchNorm weight  (required when use_bn=True)
    beta:  (k_out,)  BatchNorm bias    (required when use_bn=True)
    """
    k_out, k_in = w.shape
    lead_shape = x.shape[:-1]
    n = 1
    for s in lead_shape:
        n *= s
    residual = (k_in == k_out)

    # Lane-dense / MXU-width-aligned feature padding.
    k_in_p = _round_up(k_in, 128)
    k_out_p = _round_up(k_out, 128)

    if tile_n is None:
        tile_n = _pick_tile_n(n, k_in_p, k_out_p)
    else:
        tile_n = min(_round_up(int(tile_n), 8), _round_up(n, 8))
    n_p = _round_up(n, tile_n)
    n_tiles = n_p // tile_n

    f32 = jnp.float32
    x_flat = x.reshape(n, k_in).astype(f32)
    x_pad = jnp.pad(x_flat, ((0, n_p - n), (0, k_in_p - k_in)))
    w_pad = jnp.pad(w.astype(f32), ((0, k_out_p - k_out), (0, k_in_p - k_in)))

    compiler_params = pltpu.CompilerParams(
        dimension_semantics=("parallel",),
        vmem_limit_bytes=48 * 1024 * 1024,
    )

    x_spec = pl.BlockSpec((tile_n, k_in_p), lambda i: (i, 0))
    w_spec = pl.BlockSpec((k_out_p, k_in_p), lambda i: (0, 0))
    vec_spec = pl.BlockSpec((1, k_out_p), lambda i: (0, 0))
    y_spec = pl.BlockSpec((tile_n, k_out_p), lambda i: (i, 0))

    if not use_bn:
        b_pad = jnp.pad(b.astype(f32), (0, k_out_p - k_out)).reshape(1, k_out_p)
        out_pad = pl.pallas_call(
            functools.partial(_linear_relu_kernel, residual=residual),
            grid=(n_tiles,),
            in_specs=[x_spec, w_spec, vec_spec],
            out_specs=y_spec,
            out_shape=jax.ShapeDtypeStruct((n_p, k_out_p), f32),
            compiler_params=compiler_params,
        )(x_pad, w_pad, b_pad)
        return out_pad[:n, :k_out].reshape(*lead_shape, k_out)

    # ---- BN path, pass 1: matmul + per-tile partial stats -------------------
    y_pad, partials = pl.pallas_call(
        _linear_stats_kernel,
        grid=(n_tiles,),
        in_specs=[x_spec, w_spec],
        out_specs=(
            y_spec,
            pl.BlockSpec((None, 2, k_out_p), lambda i: (i, 0, 0)),
        ),
        out_shape=(
            jax.ShapeDtypeStruct((n_p, k_out_p), f32),
            jax.ShapeDtypeStruct((n_tiles, 2, k_out_p), f32),
        ),
        compiler_params=compiler_params,
    )(x_pad, w_pad)

    # ---- tiny cross-tile reduction + BN affine fold (O(K) wrapper work) -----
    sums = jnp.sum(partials, axis=0)                 # (2, k_out_p)
    mean = sums[0:1, :] / n                          # zero-padded rows add 0
    var = jnp.maximum(sums[1:2, :] / n - mean * mean, 0.0)
    gamma_pad = jnp.pad(gamma.astype(f32), (0, k_out_p - k_out)).reshape(1, k_out_p)
    beta_pad = jnp.pad(beta.astype(f32), (0, k_out_p - k_out)).reshape(1, k_out_p)
    scale = gamma_pad * lax.rsqrt(var + eps)
    shift = beta_pad - mean * scale

    # ---- BN path, pass 2: fused scale/shift + ReLU + residual ---------------
    in_specs2 = [y_spec, vec_spec, vec_spec]
    args2 = [y_pad, scale, shift]
    if residual:
        in_specs2.append(x_spec)                     # k_in_p == k_out_p here
        args2.append(x_pad)
    out_pad = pl.pallas_call(
        functools.partial(_scale_relu_residual_kernel, residual=residual),
        grid=(n_tiles,),
        in_specs=in_specs2,
        out_specs=y_spec,
        out_shape=jax.ShapeDtypeStruct((n_p, k_out_p), f32),
        compiler_params=compiler_params,
    )(*args2)
    return out_pad[:n, :k_out].reshape(*lead_shape, k_out)


def _reference(x, w, b, gamma=None, beta=None, *, use_bn=True, eps=1e-5):
    """Pure-JAX reference mirroring the PyTorch forward (training-mode BN)."""
    lead = x.shape[:-1]
    xf = x.reshape(-1, x.shape[-1])
    y = xf @ w.T + b
    if use_bn:
        mean = jnp.mean(y, axis=0, keepdims=True)
        var = jnp.mean((y - mean) ** 2, axis=0, keepdims=True)
        y = (y - mean) / jnp.sqrt(var + eps)
        y = y * gamma + beta
    y = jnp.maximum(y, 0.0)
    y = y.reshape(*lead, y.shape[-1])
    if x.shape[-1] == w.shape[0]:
        y = y + x
    return y


if __name__ == "__main__":
    B, S = 2, 8          # leading (batch, seq) dims -> N = 16 rows
    K_IN = 32
    K_OUT = 32           # == K_IN -> residual branch is active

    key = jax.random.PRNGKey(0)
    kx, kw, kb, kw2, kb2 = jax.random.split(key, 5)

    x = jax.random.normal(kx, (B, S, K_IN), dtype=jnp.float32)

    # PyTorch nn.Linear default init: U(-1/sqrt(k_in), 1/sqrt(k_in))
    bound = 1.0 / (K_IN ** 0.5)
    w = jax.random.uniform(kw, (K_OUT, K_IN), minval=-bound, maxval=bound,
                           dtype=jnp.float32)
    b = jax.random.uniform(kb, (K_OUT,), minval=-bound, maxval=bound,
                           dtype=jnp.float32)
    gamma = jnp.ones((K_OUT,), dtype=jnp.float32)
    beta = jnp.zeros((K_OUT,), dtype=jnp.float32)

    # 1) BN path with a forced small N-tile so the cross-tile BN reduction
    #    (multi-step grid) is actually exercised at this tiny demo size.
    out = jax.block_until_ready(
        fc_layer(x, w, b, gamma, beta, use_bn=True, tile_n=8))
    ref = _reference(x, w, b, gamma, beta, use_bn=True)
    assert out.shape == (B, S, K_OUT), out.shape
    assert jnp.allclose(out, ref, atol=1e-4, rtol=1e-4), \
        float(jnp.max(jnp.abs(out - ref)))

    # 2) BN path with the default (auto) tile sizing.
    out2 = jax.block_until_ready(fc_layer(x, w, b, gamma, beta, use_bn=True))
    assert jnp.allclose(out2, ref, atol=1e-4, rtol=1e-4), \
        float(jnp.max(jnp.abs(out2 - ref)))

    # 3) use_bn=False path, k_out != k_in (no residual): Linear + bias + ReLU.
    K_OUT2 = 48
    w2 = jax.random.uniform(kw2, (K_OUT2, K_IN), minval=-bound, maxval=bound,
                            dtype=jnp.float32)
    b2 = jax.random.uniform(kb2, (K_OUT2,), minval=-bound, maxval=bound,
                            dtype=jnp.float32)
    out3 = jax.block_until_ready(fc_layer(x, w2, b2, use_bn=False))
    ref3 = _reference(x, w2, b2, use_bn=False)
    assert out3.shape == (B, S, K_OUT2), out3.shape
    assert jnp.allclose(out3, ref3, atol=1e-4, rtol=1e-4), \
        float(jnp.max(jnp.abs(out3 - ref3)))

    print("KERNEL_OK")
</pallas_src>

<mosaic_0001>
module attributes {stable_mosaic.version = 11 : i64} {
  func.func @_linear_stats_kernel(%arg0: i32, %arg1: memref<8x128xf32, #tpu.memory_space<vmem>>, %arg2: memref<128x128xf32, #tpu.memory_space<vmem>>, %arg3: memref<8x128xf32, #tpu.memory_space<vmem>>, %arg4: memref<1x2x128xf32, #tpu.memory_space<vmem>>) attributes {dimension_semantics = [#tpu.dimension_semantics<parallel>], iteration_bounds = array<i64: 2>, scalar_prefetch = 0 : i64, scratch_operands = 0 : i64, tpu.core_type = #tpu.core_type<tc>, window_params = [{transform_indices = @transform_0, window_bounds = array<i64: 8, 128>}, {pipeline_mode = #tpu.pipeline_mode<synchronous>, transform_indices = @transform_1, window_bounds = array<i64: 128, 128>}, {transform_indices = @transform_2, window_bounds = array<i64: 8, 128>}, {transform_indices = @transform_3, window_bounds = array<i64: 1, 2, 128>}]} {
    %c0 = arith.constant 0 : index
    %c0_0 = arith.constant 0 : index
    %0 = vector.load %arg1[%c0, %c0_0] : memref<8x128xf32, #tpu.memory_space<vmem>>, vector<8x128xf32>
    %c0_1 = arith.constant 0 : index
    %c0_2 = arith.constant 0 : index
    %1 = vector.load %arg2[%c0_1, %c0_2] : memref<128x128xf32, #tpu.memory_space<vmem>>, vector<128x128xf32>
    %cst = arith.constant dense<0.000000e+00> : vector<8x128xf32>
    %2 = tpu.matmul %0, %1, %cst {dimension_numbers = #tpu.dot_dimension_numbers<[1], [1], [0], [0], [0, 0, 1, 0], [], []>} : vector<8x128xf32>, vector<128x128xf32>, vector<8x128xf32> -> vector<8x128xf32>
    %c0_3 = arith.constant 0 : index
    %c0_4 = arith.constant 0 : index
    %3 = vector.load %arg3[%c0_3, %c0_4] : memref<8x128xf32, #tpu.memory_space<vmem>>, vector<8x128xf32>
    tpu.vector_store %arg3[%c0_3, %c0_4], %2 {strides = array<i32>} : memref<8x128xf32, #tpu.memory_space<vmem>>, vector<8x128xf32>,
    %cst_5 = arith.constant dense<0.000000e+00> : vector<128xf32>
    %4 = vector.multi_reduction <add>, %2, %cst_5 [0] : vector<8x128xf32> to vector<128xf32>
    %5 = vector.shape_cast %4 : vector<128xf32> to vector<1x128xf32>
    %c0_6 = arith.constant 0 : index
    %c0_7 = arith.constant 0 : index
    %c0_8 = arith.constant 0 : index
    %6 = vector.load %arg4[%c0_6, %c0_7, %c0_8] : memref<1x2x128xf32, #tpu.memory_space<vmem>>, vector<1x1x128xf32>
    %7 = vector.shape_cast %6 : vector<1x1x128xf32> to vector<1x128xf32>
    %8 = vector.shape_cast %5 : vector<1x128xf32> to vector<1x1x128xf32>
    tpu.vector_store %arg4[%c0_6, %c0_7, %c0_8], %8 {strides = array<i32>} : memref<1x2x128xf32, #tpu.memory_space<vmem>>, vector<1x1x128xf32>,
    %9 = arith.mulf %2, %2 : vector<8x128xf32>
    %cst_9 = arith.constant dense<0.000000e+00> : vector<128xf32>
    %10 = vector.multi_reduction <add>, %9, %cst_9 [0] : vector<8x128xf32> to vector<128xf32>
    %11 = vector.shape_cast %10 : vector<128xf32> to vector<1x128xf32>
    %c0_10 = arith.constant 0 : index
    %c1 = arith.constant 1 : index
    %c0_11 = arith.constant 0 : index
    %12 = vector.load %arg4[%c0_10, %c1, %c0_11] : memref<1x2x128xf32, #tpu.memory_space<vmem>>, vector<1x1x128xf32>
    %13 = vector.shape_cast %12 : vector<1x1x128xf32> to vector<1x128xf32>
    %14 = vector.shape_cast %11 : vector<1x128xf32> to vector<1x1x128xf32>
    tpu.vector_store %arg4[%c0_10, %c1, %c0_11], %14 {strides = array<i32>} : memref<1x2x128xf32, #tpu.memory_space<vmem>>, vector<1x1x128xf32>,
    return
  }
  func.func @transform_0(%arg0: i32) -> (i32, i32) {
    %c0_i32 = arith.constant 0 : i32
    %c0_i32_0 = arith.constant 0 : i32
    return %arg0, %c0_i32 : i32, i32
  }
  func.func @transform_1(%arg0: i32) -> (i32, i32) {
    %c0_i32 = arith.constant 0 : i32
    %c0_i32_0 = arith.constant 0 : i32
    %c0_i32_1 = arith.constant 0 : i32
    return %c0_i32, %c0_i32_0 : i32, i32
  }
  func.func @transform_2(%arg0: i32) -> (i32, i32) {
    %c0_i32 = arith.constant 0 : i32
    %c0_i32_0 = arith.constant 0 : i32
    return %arg0, %c0_i32 : i32, i32
  }
  func.func @transform_3(%arg0: i32) -> (i32, i32, i32) {
    %c0_i32 = arith.constant 0 : i32
    %c0_i32_0 = arith.constant 0 : i32
    %c0_i32_1 = arith.constant 0 : i32
    return %arg0, %c0_i32, %c0_i32_0 : i32, i32, i32
  }
}

</mosaic_0001>

<bundles_post_ra>
// kernel: tpu_custom_call.1
= control target key start
LH: loop header
LB: loop body
LE: loop exit
PB: predicated region body
PF: predicated region fallthrough
CT: control target
= control target key end

     0   :  { %9 = vsyncpa [#allocation3], 0  ;;  %s967_s0 = inlined_call_operand.hbm [shape: f32[16,128], index: 0, kind: input, shape index: {}]   ;;  %s968_s1 = inlined_call_operand.hbm [shape: f32[128,128], index: 1, kind: input, shape index: {}]   ;;  %s969_s2 = inlined_call_operand.hbm [shape: f32[16,128], index: 2, kind: output, shape index: {0}]   ;;  %s970_s3 = inlined_call_operand.hbm [shape: f32[2,2,128], index: 3, kind: output, shape index: {1}]  }
   0x1   :  { %11 = vsyncpa [#allocation3 + $0x1], 0 }
   0x2   :  { %12 = vsyncpa [#allocation6], 0 }
   0x3   :  { %13 = vsyncpa [#allocation4], 0 }
   0x4   :  { %15 = vsyncpa [#allocation4 + $0x1], 0 }
   0x5   :  { %16 = vsyncpa [#allocation9], 0 }
   0x6   :  { %18 = vsyncpa [#allocation9 + $0x1], 0  ;;  %s776_s12 = smov 0   ;;  %s778_s13 = smov 0  }
   0x7   :  { %s780_s14 = smov 0   ;;  %s782_s15 = smov 0  }
   0x8 LB: > { %s797_s16 = sadd.s32 4294967295, %s746_s15   ;;  %s459_s17 = sadd.s32 4294967294, %s746_s15   ;;  %s746_s15 = sphi %s782_s15, %s992_s15   ;;  %s742_s14 = sphi %s780_s14, %s991_s14   ;;  %s738_s13 = sphi %s778_s13, %s990_s13   ;;  %s734_s12 = sphi %s776_s12, %s989_s12  }
   0x9   : > { %p44_p0 = scmp.ne.s32.totalorder %s738_s13, %s734_s12  ;;  %p971_p1 = scmp.eq.s32.totalorder %s797_s16, 0 }
   0xa   : > { %p95_p3 = scmp.eq.s32.totalorder %s459_s17, 1  ;;  %p460_p5 = scmp.ge.s32.totalorder %s746_s15, 1 }
   0xb   : > { %p806_p4 = por %p971_p1, %p44_p0  ;;  %p128_p7 = scmp.lt.s32.totalorder %s746_s15, 3 }
   0xc   : > { %p811_p6 = por %p95_p3, %p44_p0  ;;  %s748_s21 = smov [#allocation5]  }
   0xd   : > { %s975_s18 = scalar_select %p806_p4, 1, 0 }
   0xe   : > { %s976_s19 = scalar_select %p811_p6, 1, 0 }
   0xf   : > { %p816_p8 = pnand %p460_p5, %p128_p7  ;;  %s140_s22 = sshll.u32 %s748_s21, 4  ;;  %s141_s22 = int_to_ptr.vmem [resolvable:$true] %s140_s22 }
  0x10   : > { %s830_s24 = sadd.s32 1, %s746_s15   ;;  %s31_s25 = sadd.s32 1, %s742_s14 }
  0x11   : > { %s977_s20 = scalar_select %p816_p8, 1, 0 }
  0x12   : > { %p538_p9 = pneg %p816_p8  ;;  %s28_s26 = ssub.s32 %s746_s15, %s830_s24 }
  0x13   : > { %s605_s27 = scalar_lea.vmem %s141_s22, 2048  ;;  %p613_p5 = scmp.lt.s32.totalorder %s141_s22, %s141_s22 }
  0x14   : > { %p825_p11 = pnand %p538_p9, %p971_p1  ;;  %p606_p13 = scmp.ne.s32.totalorder %s141_s22, %s605_s27 }
  0x15   : > { %p614_p7 = scmp.lt.s32.totalorder %s605_s27, %s605_s27 }
  0x16   : > { %p596_p12 = pneg %p825_p11 }
  0x17   : > { %p615_p10 = por %p614_p7, %p613_p5 }
  0x18   : > { %p608_p0 = pnand %p606_p13, %p596_p12 }
  0x1a   : > { %p609_p3 = pneg %p608_p0 }
  0x1c   : > { %p616_p2 = pnand %p615_p10, %p609_p3 }
  0x1e   : > { %619 = shalt.err (!%p616_p2)
}
  0x1f   : > { %s749_s28 = smov 128   ;;  %s750_s29 = smov 8  }
  0x20   : > { %541 = dma.hbm_to_vmem [thread:$0]  (!%p825_p11), %s968_s1, 2048, %s141_s22, [#allocation6], %s749_s28, %s749_s28, %s750_s29  }
  0x21   : > { %p29_p9 = scmp.eq.s32.totalorder %s28_s26, 0  ;;  %p38_p12 = scmp.ne.s32.totalorder %s742_s14, %s738_s13 }
  0x22   : > { %p39_p10 = scmp.eq.s32.totalorder %s746_s15, 0  ;;  %p554_p2 = scmp.lt.s32.totalorder %s746_s15, 2 }
  0x23   : > { %s847_s5 = scalar_select %p29_p9, %s742_s14, %s31_s25  }
  0x24   : > { %p40_p13 = por %p39_p10, %p38_p12  ;;  %p979_p0 = scmp.eq.s32.totalorder %s797_s16, 1 }
  0x25   : > { %s154_s7 = sand.u32 1, %s742_s14   ;;  %s464_s8 = sshll.u32 %s746_s15, 7 }
  0x26   : > { %p851_p3 = por %p979_p0, %p38_p12  ;;  %s463_s9 = sshll.u32 %s154_s7, 3 }
  0x27   : > { %s860_s17 = scalar_lea.hbm %s967_s0, %s464_s8  ;;  %s158_s21 = scalar_lea.vmem [#allocation2], %s463_s9 }
  0x28   : > { %s980_s6 = scalar_select %p851_p3, 1, 0 }
  0x29   : > { %s165_s22 = sshll.u32 %s158_s21, 4  ;;  %p862_p11 = pnand %p554_p2, %p40_p13  ;;  %s166_s22 = int_to_ptr.vmem [resolvable:$true] %s165_s22 }
  0x2a   : > { %s155_s25 = scalar_lea.sflag [#allocation3], %s154_s7  ;;  %s620_s26 = scalar_lea.hbm %s860_s17, 128 }
  0x2b   : > { %p621_p5 = scmp.ne.s32.totalorder %s860_s17, %s620_s26  ;;  %p622_p7 = pneg %p862_p11 }
  0x2c   : > { %s625_s29 = scalar_lea.hbm %s967_s0, 256  ;;  %p626_p10 = scmp.lt.s32.totalorder %s860_s17, %s967_s0 }
  0x2d   : > { %p623_p9 = pnand %p622_p7, %p621_p5  ;;  %p627_p2 = scmp.lt.s32.totalorder %s625_s29, %s620_s26 }
  0x2f   : > { %p624_p12 = pneg %p623_p9  ;;  %p628_p13 = por %p627_p2, %p626_p10 }
  0x31   : > { %p629_p0 = pnand %p628_p13, %p624_p12 }
  0x33   : > { %632 = shalt.err (!%p629_p0)
}
  0x34   : > { %s633_s8 = scalar_lea.vmem %s166_s22, 128  ;;  %s751_s7 = smov [#allocation2]  }
  0x35   : > { %p634_p1 = scmp.ne.s32.totalorder %s166_s22, %s633_s8  ;;  %s638_s9 = sshll.u32 %s751_s7, 4  ;;  %s639_s9 = int_to_ptr.vmem [resolvable:$false] %s638_s9 }
  0x36   : > { %s640_s10 = scalar_lea.vmem %s639_s9, 256  ;;  %p641_p5 = scmp.lt.s32.totalorder %s166_s22, %s639_s9 }
  0x37   : > { %p636_p6 = pnand %p634_p1, %p622_p7  ;;  %p642_p9 = scmp.lt.s32.totalorder %s640_s10, %s633_s8 }
  0x39   : > { %p637_p3 = pneg %p636_p6  ;;  %p643_p4 = por %p642_p9, %p641_p5 }
  0x3b   : > { %p644_p8 = pnand %p643_p4, %p637_p3 }
  0x3d   : > { %647 = shalt.err (!%p644_p8)
}
  0x3e   : > { %545 = dma.hbm_to_vmem [thread:$0]  (!%p862_p11), %s860_s17, 128, %s166_s22, %s155_s25  }
  0x3f   : > { %p982_p12 = scmp.ne.s32.totalorder %s977_s20, 0 }
  0x40   : > { %s883_s11 = sand.u32 (!%p982_p12), 1, %s738_s13   ;;  %p983_p1 = scmp.ne.s32.totalorder (!%p982_p12), %s975_s18, 0 }
  0x41   : > { %174 = sbr.rel (%p982_p12) target bundleno = 370 (0x172), region = 28  ;;  %s466_s21 = sshll.u32 (!%p982_p12), %s883_s11, 3 }
  0x42   : > { %s177_s26 = scalar_lea.sflag (!%p982_p12), [#allocation3], %s883_s11  ;;  %s889_s27 = scalar_lea.vmem (!%p982_p12), [#allocation2], %s466_s21 }
  0x46   : > { %717 = dma.done.wait (%p983_p1), %s177_s26, 128  }
  0x47   : > { %719 = vsyncadd (%p983_p1), %s177_s26, 4294967168  ;;  %p984_p4 = scmp.eq.s32.totalorder %s797_s16, 0 }
  0x49   : > { %721 = dma.done.wait (%p984_p4), [#allocation6], 2048   ;;  %p985_p6 = pmov %p984_p4 }
  0x4a   : > { %v752_v0 = vmov 0.0   ;;  %vm753_vm0 = vmmov 0   ;;  %v228_v1 = vld [vmem:[#allocation5 + $0x78] sm:$0xff]  ;;  %v227_v2 = vld [vmem:[#allocation5 + $0x70] sm:$0xff]  ;;  %v226_v3 = vld [vmem:[#allocation5 + $0x68] sm:$0xff]  ;;  %s472_s18 = sshll.u32 %s797_s16, 7 }
  0x4b   : > { %723 = vsyncadd (%p985_p6), [#allocation6], 4294965248  ;;  %493 = vmatprep.subr.mxu0 %v752_v0  ;;  %525 = vmatprep.mubr.msk.f32.mxu0 %vm753_vm0, %v752_v0  ;;  %v225_v4 = vld [vmem:[#allocation5 + $0x60] sm:$0xff]  ;;  %v224_v5 = vld [vmem:[#allocation5 + $0x58] sm:$0xff]  ;;  %s204_s20 = scalar_lea.vmem [#allocation7], %s466_s21  ;;  %s906_s25 = scalar_lea.hbm %s969_s2, %s472_s18 }
  0x4c   : > { %494 = vmatpush3.xpose.msra.mxu0 %v228_v1  ;;  %v223_v6 = vld [vmem:[#allocation5 + $0x50] sm:$0xff]  ;;  %v222_v7 = vld [vmem:[#allocation5 + $0x48] sm:$0xff]  ;;  %v221_v8 = vld [vmem:[#allocation5 + $0x40] sm:$0xff]  ;;  %s334_s17 = sshll.u32 %s204_s20, 4  ;;  %s316_s28 = scalar_lea.sflag [#allocation4], %s883_s11  ;;  %s908_s17 = int_to_ptr.vmem [resolvable:$true] %s334_s17 }
  0x4d   : > { %495 = vmatprep.subr.mxu0 %v752_v0  ;;  %v220_v9 = vld [vmem:[#allocation5 + $0x38] sm:$0xff]  ;;  %v219_v10 = vld [vmem:[#allocation5 + $0x30] sm:$0xff]  ;;  %v218_v11 = vld [vmem:[#allocation5 + $0x28] sm:$0xff]  ;;  %s648_s29 = scalar_lea.vmem %s908_s17, 128  ;;  %p986_p3 = scmp.ne.s32.totalorder %s980_s6, 0 }
  0x4e   : > { %v217_v12 = vld [vmem:[#allocation5 + $0x20] sm:$0xff]  ;;  %v216_v13 = vld [vmem:[#allocation5 + $0x18] sm:$0xff]  ;;  %v215_v14 = vld [vmem:[#allocation5 + $0x10] sm:$0xff]  ;;  %p649_p8 = scmp.ne.s32.totalorder %s908_s17, %s648_s29  ;;  %s754_s30 = smov [#allocation7]  }
  0x4f   : > { %v214_v15 = vld [vmem:[#allocation5 + $0x8] sm:$0xff]  ;;  %v213_v16 = vld [vmem:[#allocation5] sm:$0xff]  ;;  %v212_v17 = vld [vmem:[%s889_s27] sm:$0xff]  ;;  %s652_s4 = sshll.u32 %s754_s30, 4  ;;  %s653_s4 = int_to_ptr.vmem [resolvable:$false] %s652_s4 }
  0x50   : > { %496 = vmatpush3.xpose.msra.mxu0 %v227_v2  ;;  %p650_p11 = pnand %p649_p8, %p986_p3  ;;  %s654_s8 = scalar_lea.vmem %s653_s4, 256 }
  0x51   : > { %497 = vmatprep.subr.mxu0 %v752_v0  ;;  %p655_p10 = scmp.lt.s32.totalorder %s908_s17, %s653_s4  ;;  %p656_p2 = scmp.lt.s32.totalorder %s654_s8, %s648_s29 }
  0x52   : > { %p651_p7 = pneg %p650_p11 }
  0x53   : > { %p657_p13 = por %p656_p2, %p655_p10 }
  0x54   : > { %498 = vmatpush3.xpose.msra.mxu0 %v226_v3 }
  0x55   : > { %499 = vmatprep.subr.mxu0 %v752_v0  ;;  %p658_p0 = pnand %p657_p13, %p651_p7 }
  0x58   : > { %500 = vmatpush3.xpose.msra.mxu0 %v225_v4 }
  0x59   : > { %501 = vmatprep.subr.mxu0 %v752_v0 }
  0x5c   : > { %502 = vmatpush3.xpose.msra.mxu0 %v224_v5 }
  0x5d   : > { %503 = vmatprep.subr.mxu0 %v752_v0 }
  0x60   : > { %504 = vmatpush3.xpose.msra.mxu0 %v223_v6 }
  0x61   : > { %505 = vmatprep.subr.mxu0 %v752_v0 }
  0x64   : > { %506 = vmatpush3.xpose.msra.mxu0 %v222_v7 }
  0x65   : > { %507 = vmatprep.subr.mxu0 %v752_v0 }
  0x68   : > { %508 = vmatpush3.xpose.msra.mxu0 %v221_v8 }
  0x69   : > { %509 = vmatprep.subr.mxu0 %v752_v0 }
  0x6c   : > { %510 = vmatpush3.xpose.msra.mxu0 %v220_v9 }
  0x6d   : > { %511 = vmatprep.subr.mxu0 %v752_v0 }
  0x70   : > { %512 = vmatpush3.xpose.msra.mxu0 %v219_v10 }
  0x71   : > { %513 = vmatprep.subr.mxu0 %v752_v0 }
  0x74   : > { %514 = vmatpush3.xpose.msra.mxu0 %v218_v11 }
  0x75   : > { %515 = vmatprep.subr.mxu0 %v752_v0 }
  0x78   : > { %516 = vmatpush3.xpose.msra.mxu0 %v217_v12 }
  0x79   : > { %517 = vmatprep.subr.mxu0 %v752_v0 }
  0x7c   : > { %518 = vmatpush3.xpose.msra.mxu0 %v216_v13 }
  0x7d   : > { %519 = vmatprep.subr.mxu0 %v752_v0 }
  0x80   : > { %520 = vmatpush3.xpose.msra.mxu0 %v215_v14 }
  0x81   : > { %521 = vmatprep.subr.mxu0 %v752_v0 }
  0x84   : > { %522 = vmatpush3.xpose.msra.mxu0 %v214_v15 }
  0x85   : > { %523 = vmatprep.subr.mxu0 %v752_v0 }
  0x88   : > { %524 = vmatpush3.xpose.msra.mxu0 %v213_v16 }
  0x8b   : > { %526 = vmatmul.mubr.f32.vlgmr.msra.gmra.mxu0 %v212_v17 }
 0x14b   : > { %v295_v18 = vpop.f32.mrf.mxu0 }
 0x14c   : > { %v300_v19 = vrot.slane %v295_v18, 4  ;;  %v307_v20 = vmul.f32 %v295_v18, %v295_v18  ;;  %299 = vst [vmem:[%s204_s20] sm:$0xff] %v295_v18 }
 0x14d   : > { %v527_v21 = vpop.f32.mrf.mxu0 }
 0x14e   : > { %661 = shalt.err (!%p658_p0)
}
 0x14f   : > { %s662_s7 = scalar_lea.hbm %s906_s25, 128  ;;  %s666_s21 = scalar_lea.hbm %s969_s2, 256 }
 0x150   : > { %p663_p5 = scmp.ne.s32.totalorder %s906_s25, %s662_s7  ;;  %p667_p1 = scmp.lt.s32.totalorder %s906_s25, %s969_s2 }
 0x151   : > { %p668_p4 = scmp.lt.s32.totalorder %s666_s21, %s662_s7 }
 0x152   : > { %p664_p9 = pnand %p663_p5, %p986_p3 }
 0x153   : > { %p669_p6 = por %p668_p4, %p667_p1 }
 0x154   : > { %p665_p12 = pneg %p664_p9 }
 0x156   : > { %p670_p8 = pnand %p669_p6, %p665_p12 }
 0x158   : > { %673 = shalt.err (!%p670_p8)
}
 0x159   : > { %534 = dma.vmem_to_hbm [thread:$0]  (%p986_p3), %s908_s17, 128, %s906_s25, %s316_s28   ;;  %v301_v22 = vadd.f32 %v300_v19, %v295_v18  ;;  %v308_v23 = vrot.slane %v307_v20, 4 }
 0x15a   : > { %s469_s18 = sshll.u32 %s883_s11, 1  ;;  %s473_s20 = sshll.u32 %s797_s16, 5 }
 0x15b   : > { %v302_v24 = vrot.slane %v301_v22, 2  ;;  %v309_v25 = vadd.f32 %v308_v23, %v307_v20  ;;  %s211_s22 = scalar_lea.vmem [#allocation8], %s469_s18  ;;  %s345_s25 = scalar_lea.hbm %s970_s3, %s473_s20 }
 0x15c   : > { %s347_s23 = sshll.u32 %s211_s22, 4  ;;  %s321_s28 = scalar_lea.sflag [#allocation9], %s883_s11  ;;  %s348_s23 = int_to_ptr.vmem [resolvable:$true] %s347_s23 }
 0x15d   : > { %v303_v26 = vadd.f32 %v302_v24, %v301_v22  ;;  %v310_v27 = vrot.slane %v309_v25, 2  ;;  %s674_s30 = scalar_lea.vmem %s348_s23, 32  ;;  %s755_s4 = smov [#allocation8]  }
 0x15e   : > { %p675_p11 = scmp.ne.s32.totalorder %s348_s23, %s674_s30  ;;  %s678_s16 = sshll.u32 %s755_s4, 4  ;;  %s679_s16 = int_to_ptr.vmem [resolvable:$false] %s678_s16 }
 0x15f   : > { %v304_v28 = vrot.slane %v303_v26, 1  ;;  %v311_v29 = vadd.f32 %v310_v27, %v309_v25  ;;  %s680_s8 = scalar_lea.vmem %s679_s16, 64  ;;  %p681_p2 = scmp.lt.s32.totalorder %s348_s23, %s679_s16 }
 0x160   : > { %p676_p7 = pnand %p675_p11, %p986_p3  ;;  %p682_p13 = scmp.lt.s32.totalorder %s680_s8, %s674_s30 }
 0x161   : > { %v305_v30 = vadd.f32 %v304_v28, %v303_v26  ;;  %v312_v31 = vrot.slane %v311_v29, 1 }
 0x162   : > { %p677_p10 = pneg %p676_p7  ;;  %p683_p0 = por %p682_p13, %p681_p2 }
 0x163   : > { %v313_v32 = vadd.f32 %v312_v31, %v311_v29  ;;  %306 = vst [vmem:[%s211_s22] sm:$0x1] %v305_v30 }
 0x164   : > { %p684_p5 = pnand %p683_p0, %p677_p10 }
 0x165   : > { %314 = vst [vmem:[%s211_s22 + $0x1] sm:$0x1] %v313_v32 }
 0x166   : > { %687 = shalt.err (!%p684_p5)
}
 0x167   : > { %s688_s7 = scalar_lea.hbm %s345_s25, 32  ;;  %s692_s10 = scalar_lea.hbm %s970_s3, 64 }
 0x168   : > { %p689_p9 = scmp.ne.s32.totalorder %s345_s25, %s688_s7  ;;  %p693_p4 = scmp.lt.s32.totalorder %s345_s25, %s970_s3 }
 0x169   : > { %p694_p6 = scmp.lt.s32.totalorder %s692_s10, %s688_s7 }
 0x16a   : > { %p690_p12 = pnand %p689_p9, %p986_p3 }
 0x16b   : > { %p695_p8 = por %p694_p6, %p693_p4 }
 0x16c   : > { %p691_p1 = pneg %p690_p12 }
 0x16e   : > { %p696_p11 = pnand %p695_p8, %p691_p1 }
 0x170   : > { %699 = shalt.err (!%p696_p11)
}
 0x171   : > { %535 = dma.vmem_to_hbm [thread:$0]  (%p986_p3), %s348_s23, 32, %s345_s25, %s321_s28  }
 0x172 PF: > { %s359_s27 = sand.u32 1, %s734_s12   ;;  %p987_p7 = scmp.ne.s32.totalorder %s976_s19, 0 }
 0x173   : > { %p988_p10 = scmp.ge.s32.totalorder %s746_s15, 2  ;;  %s360_s18 = scalar_lea.sflag [#allocation4], %s359_s27 }
 0x175   : > { %p547_p2 = pnand %p988_p10, %p987_p7 }
 0x177   : > { %p548_p13 = pneg %p547_p2 }
 0x179   : > { %725 = dma.done.wait (%p548_p13), %s360_s18, 128  }
 0x17a   : > { %727 = vsyncadd (%p548_p13), %s360_s18, 4294967168  ;;  %s369_s20 = scalar_lea.sflag [#allocation9], %s359_s27 }
 0x17b   : > { %729 = dma.done.wait (%p548_p13), %s369_s20, 32  }
 0x17c   : > { %731 = vsyncadd (%p548_p13), %s369_s20, 4294967264  ;;  %p21_p3 = scmp.ge.s32.totalorder %s830_s24, 4   ;;  %s989_s12 = smov %s738_s13 }
 0x17d   : > { %s990_s13 = smov %s742_s14  ;;  %s991_s14 = smov %s847_s5 }
 0x17e   : > { %s992_s15 = smov %s830_s24  ;;  %23 = sbr.rel (!%p21_p3) target bundleno = 8 (0x8), region = 94 }
 0x183   :  { %374 = vsyncpa [#allocation3], 1 }
 0x184   :  { %376 = vsyncpa [#allocation3 + $0x1], 1 }
 0x185   :  { %377 = vsyncpa [#allocation6], 1 }
 0x186   :  { %378 = vsyncpa [#allocation4], 1 }
 0x187   :  { %380 = vsyncpa [#allocation4 + $0x1], 1 }
 0x188   :  { %381 = vsyncpa [#allocation9], 1 }
 0x189   :  { %383 = vsyncpa [#allocation9 + $0x1], 1 }

</bundles_post_ra>
